<compile_context>
chip_gen: v7x
topology: tpu7x:2x2x1
jax: 0.10.0
libtpu: 0.0.40
codegen_flags: <defaults>
</compile_context>

<pallas_src>
import jax
import jax.numpy as jnp
from jax.experimental import pallas as pl
from jax.experimental.pallas import tpu as pltpu


# ----------------------------------------------------------------------------
# Kernel
# ----------------------------------------------------------------------------
def _l_spa_kernel(org_ref, enh_ref, out_ref, dp_acc):
    f32 = jnp.float32
    bt, c, ht, w = org_ref.shape          # input block  (Bt, C, Ht, W)
    _, hp, wp = out_ref.shape             # output block (Bt, Hp, Wp)
    htp = ht // 4                          # pooled rows produced by this step
    n_ht = hp // htp                       # number of H tiles (static)
    hi = pl.program_id(1)

    # --- pooling matrices generated in-kernel (cheap VPU filler, no const DMA)
    # PH[p, r] = 1/(4C) when input row r pools into output row p (1/C folded).
    ph_p = jax.lax.broadcasted_iota(jnp.int32, (htp, ht), 0)
    ph_r = jax.lax.broadcasted_iota(jnp.int32, (htp, ht), 1)
    t = ph_r - 4 * ph_p
    ph = jnp.where((t >= 0) & (t < 4), f32(1.0 / (4.0 * c)), f32(0.0))   # (Htp, Ht)

    # PW[r, q] = 1/4 when input column r pools into output column q.
    pw_r = jax.lax.broadcasted_iota(jnp.int32, (w, wp), 0)
    pw_q = jax.lax.broadcasted_iota(jnp.int32, (w, wp), 1)
    u = pw_r - 4 * pw_q
    pw = jnp.where((u >= 0) & (u < 4), f32(0.25), f32(0.0))              # (W, Wp)

    for bi in range(bt):
        # Channel-summed difference, accumulated in f32 regardless of the
        # (possibly bf16) input dtype; per-channel loads keep live f32 slabs small.
        d = org_ref[bi, 0].astype(f32) - enh_ref[bi, 0].astype(f32)      # (Ht, W)
        for ci in range(1, c):
            d = d + (org_ref[bi, ci].astype(f32) - enh_ref[bi, ci].astype(f32))

        # AvgPool2d(4) of the channel-mean difference, on the MXU.
        dpb = jnp.dot(jnp.dot(ph, d, preferred_element_type=f32), pw,
                      preferred_element_type=f32)                        # (Htp, Wp)

        # Stash this tile's pooled rows in the persistent accumulator.
        if n_ht == 1:
            dp_acc[bi] = dpb
        else:
            r0 = pl.multiple_of(hi * htp, htp)
            dp_acc[bi, pl.ds(r0, htp), :] = dpb

    # --- epilogue: directional zero-padded 3x3 diff convs on the full pooled map
    def _epilogue():
        rows = jax.lax.broadcasted_iota(jnp.int32, (hp, wp), 0)
        cols = jax.lax.broadcasted_iota(jnp.int32, (hp, wp), 1)
        for bi in range(bt):
            dp = dp_acc[bi]                                              # (Hp, Wp)
            zero = jnp.zeros_like(dp)
            # Neighbours via XLU rolls; wrapped boundary entries masked to zero
            # (== the conv's zero padding).
            nbr_l = jnp.where(cols == 0, zero, pltpu.roll(dp, 1, axis=1))          # dp[i, j-1]
            nbr_r = jnp.where(cols == wp - 1, zero, pltpu.roll(dp, wp - 1, axis=1))  # dp[i, j+1]
            nbr_u = jnp.where(rows == 0, zero, pltpu.roll(dp, 1, axis=0))          # dp[i-1, j]
            nbr_d = jnp.where(rows == hp - 1, zero, pltpu.roll(dp, hp - 1, axis=0))  # dp[i+1, j]
            d_l = dp - nbr_l
            d_r = dp - nbr_r
            d_u = dp - nbr_u
            d_d = dp - nbr_d
            e = d_l * d_l + d_r * d_r + d_u * d_u + d_d * d_d
            out_ref[bi] = e.astype(out_ref.dtype)

    if n_ht == 1:
        _epilogue()
    else:
        pl.when(hi == n_ht - 1)(_epilogue)


# ----------------------------------------------------------------------------
# Tile / VMEM sizing
# ----------------------------------------------------------------------------
def _vmem_capacity_bytes():
    try:
        cap = int(pltpu.get_tpu_info().vmem_capacity_bytes)
        if cap > 0:
            return cap
    except Exception:
        pass
    return 64 << 20   # conservative fallback = v7x per-TensorCore VMEM


def _est_step_bytes(bt, ht, c, w, hp, wp, in_bytes):
    htp = ht // 4
    est = 2 * 2 * bt * c * ht * w * in_bytes      # org + enh blocks, double-buffered
    est += 4 * ht * w * 4                         # f32 diff temporaries (reused per image)
    est += (htp * ht + w * wp + htp * w) * 4      # ph, pw, ph@d intermediate
    est += (1 + 12 + 2) * bt * hp * wp * 4        # pooled scratch + epilogue temps + out blk
    return est


def _choose_tiles(b, c, h, w, hp, wp, in_bytes, budget):
    # Batch block: cap at 8 (python unroll bound) and keep >= 2 parallel grid
    # steps when B >= 2 so both v7x TensorCores get work.
    bt_cap = 1 if b < 2 else min(8, max(1, b // 2))
    for bt in range(bt_cap, 0, -1):
        if b % bt == 0 and _est_step_bytes(bt, h, c, w, hp, wp, in_bytes) <= budget:
            return bt, h
    # Single image per step; tile along H (Ht | H; Ht multiple of 32 preferred
    # for aligned scratch writes, else multiple of 8 for the BlockSpec rule).
    cands = [x for x in range(h - h % 32, 31, -32) if h % x == 0]
    cands += [x for x in range(h - h % 8, 7, -8) if h % x == 0 and x % 32 != 0]
    for ht in cands:
        if _est_step_bytes(1, ht, c, w, hp, wp, in_bytes) <= budget:
            return 1, ht
    return 1, (cands[-1] if cands else h)


# ----------------------------------------------------------------------------
# Wrapper
# ----------------------------------------------------------------------------
def l_spa_pallas(org, enhance):
    b, c, h, w = org.shape
    assert enhance.shape == (b, c, h, w), (org.shape, enhance.shape)
    assert h % 4 == 0 and w % 4 == 0, "AvgPool2d(4): H, W must be multiples of 4"
    hp, wp = h // 4, w // 4

    dtype = jnp.promote_types(org.dtype, enhance.dtype)
    org = org.astype(dtype)          # no-op when dtypes already match (no f32 upcast)
    enhance = enhance.astype(dtype)
    in_bytes = jnp.dtype(dtype).itemsize

    vmem_cap = _vmem_capacity_bytes()
    usable = vmem_cap - (8 << 20)                 # headroom for compiler scratch
    bt, ht = _choose_tiles(b, c, h, w, hp, wp, in_bytes, int(0.7 * usable))
    est = _est_step_bytes(bt, ht, c, w, hp, wp, in_bytes)
    vmem_limit = int(max(16 << 20, min(usable, 2 * est + (16 << 20))))

    grid = (b // bt, h // ht)

    out = pl.pallas_call(
        _l_spa_kernel,
        out_shape=jax.ShapeDtypeStruct((b, hp, wp), jnp.float32),
        grid_spec=pltpu.PrefetchScalarGridSpec(
            num_scalar_prefetch=0,
            grid=grid,
            in_specs=[
                pl.BlockSpec((bt, c, ht, w), lambda bi, hi: (bi, 0, hi, 0)),   # org
                pl.BlockSpec((bt, c, ht, w), lambda bi, hi: (bi, 0, hi, 0)),   # enhance
            ],
            out_specs=pl.BlockSpec((bt, hp, wp), lambda bi, hi: (bi, 0, 0)),
            scratch_shapes=[pltpu.VMEM((bt, hp, wp), jnp.float32)],
        ),
        compiler_params=pltpu.CompilerParams(
            dimension_semantics=("parallel", "arbitrary"),
            vmem_limit_bytes=vmem_limit,
        ),
    )(org, enhance)
    return out.reshape(b, 1, hp, wp)


# ----------------------------------------------------------------------------
# Pure-JAX reference (mirrors the PyTorch forward's returned value only)
# ----------------------------------------------------------------------------
def l_spa_reference(org, enhance):
    org = org.astype(jnp.float32)
    enhance = enhance.astype(jnp.float32)
    org_mean = jnp.mean(org, axis=1, keepdims=True)
    enh_mean = jnp.mean(enhance, axis=1, keepdims=True)

    def pool(x):
        bb, cc, hh, ww = x.shape
        return x.reshape(bb, cc, hh // 4, 4, ww // 4, 4).mean(axis=(3, 5))

    op, ep = pool(org_mean), pool(enh_mean)

    def dir_diffs(p):
        pad = jnp.pad(p, ((0, 0), (0, 0), (1, 1), (1, 1)))
        left = p - pad[:, :, 1:-1, :-2]
        right = p - pad[:, :, 1:-1, 2:]
        up = p - pad[:, :, :-2, 1:-1]
        down = p - pad[:, :, 2:, 1:-1]
        return left, right, up, down

    ol, orr, ou, od = dir_diffs(op)
    el, er, eu, ed = dir_diffs(ep)
    return (ol - el) ** 2 + (orr - er) ** 2 + (ou - eu) ** 2 + (od - ed) ** 2


if __name__ == "__main__":
    key = jax.random.PRNGKey(0)
    k1, k2 = jax.random.split(key)
    B, C, H, W = 2, 4, 16, 16
    org = jax.random.uniform(k1, (B, C, H, W), dtype=jnp.float32)
    enhance = jax.random.uniform(k2, (B, C, H, W), dtype=jnp.float32)

    # f32 path
    out = jax.block_until_ready(l_spa_pallas(org, enhance))
    ref = l_spa_reference(org, enhance)
    assert out.shape == (B, 1, H // 4, W // 4), out.shape
    assert jnp.allclose(out, ref, atol=1e-5, rtol=1e-4), \
        float(jnp.max(jnp.abs(out - ref)))

    # native bf16 path: half the HBM traffic, f32 accumulation inside the kernel
    org_bf = org.astype(jnp.bfloat16)
    enh_bf = enhance.astype(jnp.bfloat16)
    out_bf = jax.block_until_ready(l_spa_pallas(org_bf, enh_bf))
    ref_bf = l_spa_reference(org_bf, enh_bf)
    assert jnp.allclose(out_bf, ref_bf, atol=1e-4, rtol=1e-3), \
        float(jnp.max(jnp.abs(out_bf - ref_bf)))

    print("KERNEL_OK")
</pallas_src>

<mosaic_0001>
module attributes {stable_mosaic.version = 11 : i64} {
  func.func @_l_spa_kernel(%arg0: i32, %arg1: i32, %arg2: memref<1x4x16x16xf32, #tpu.memory_space<vmem>>, %arg3: memref<1x4x16x16xf32, #tpu.memory_space<vmem>>, %arg4: memref<1x4x4xf32, #tpu.memory_space<vmem>>, %arg5: memref<1x4x4xf32, #tpu.memory_space<vmem>>) attributes {dimension_semantics = [#tpu.dimension_semantics<parallel>, #tpu.dimension_semantics<arbitrary>], iteration_bounds = array<i64: 2, 1>, scalar_prefetch = 0 : i64, scratch_operands = 1 : i64, tpu.core_type = #tpu.core_type<tc>, window_params = [{transform_indices = @transform_0, window_bounds = array<i64: 1, 4, 16, 16>}, {transform_indices = @transform_1, window_bounds = array<i64: 1, 4, 16, 16>}, {transform_indices = @transform_2, window_bounds = array<i64: 1, 4, 4>}]} {
    %0 = tpu.iota {dimensions = array<i32: 0>} : vector<4x16xi32>
    %1 = tpu.iota {dimensions = array<i32: 1>} : vector<4x16xi32>
    %c4_i32 = arith.constant 4 : i32
    %2 = vector.broadcast %c4_i32 : i32 to vector<4x16xi32>
    %3 = arith.muli %2, %0 : vector<4x16xi32>
    %4 = arith.subi %1, %3 : vector<4x16xi32>
    %c0_i32 = arith.constant 0 : i32
    %5 = vector.broadcast %c0_i32 : i32 to vector<4x16xi32>
    %6 = arith.cmpi sge, %4, %5 : vector<4x16xi32>
    %c4_i32_0 = arith.constant 4 : i32
    %7 = vector.broadcast %c4_i32_0 : i32 to vector<4x16xi32>
    %8 = arith.cmpi slt, %4, %7 : vector<4x16xi32>
    %9 = arith.andi %6, %8 : vector<4x16xi1>
    %cst = arith.constant 6.250000e-02 : f32
    %cst_1 = arith.constant 0.000000e+00 : f32
    %10 = vector.broadcast %cst : f32 to vector<4x16xf32>
    %11 = vector.broadcast %cst_1 : f32 to vector<4x16xf32>
    %12 = arith.select %9, %10, %11 : vector<4x16xi1>, vector<4x16xf32>
    %13 = tpu.iota {dimensions = array<i32: 0>} : vector<16x4xi32>
    %14 = tpu.iota {dimensions = array<i32: 1>} : vector<16x4xi32>
    %c4_i32_2 = arith.constant 4 : i32
    %15 = vector.broadcast %c4_i32_2 : i32 to vector<16x4xi32>
    %16 = arith.muli %15, %14 : vector<16x4xi32>
    %17 = arith.subi %13, %16 : vector<16x4xi32>
    %c0_i32_3 = arith.constant 0 : i32
    %18 = vector.broadcast %c0_i32_3 : i32 to vector<16x4xi32>
    %19 = arith.cmpi sge, %17, %18 : vector<16x4xi32>
    %c4_i32_4 = arith.constant 4 : i32
    %20 = vector.broadcast %c4_i32_4 : i32 to vector<16x4xi32>
    %21 = arith.cmpi slt, %17, %20 : vector<16x4xi32>
    %22 = arith.andi %19, %21 : vector<16x4xi1>
    %cst_5 = arith.constant 2.500000e-01 : f32
    %cst_6 = arith.constant 0.000000e+00 : f32
    %23 = vector.broadcast %cst_5 : f32 to vector<16x4xf32>
    %24 = vector.broadcast %cst_6 : f32 to vector<16x4xf32>
    %25 = arith.select %22, %23, %24 : vector<16x4xi1>, vector<16x4xf32>
    %c0 = arith.constant 0 : index
    %c0_7 = arith.constant 0 : index
    %c0_8 = arith.constant 0 : index
    %c0_9 = arith.constant 0 : index
    %26 = vector.load %arg2[%c0, %c0_7, %c0_8, %c0_9] : memref<1x4x16x16xf32, #tpu.memory_space<vmem>>, vector<1x1x16x16xf32>
    %27 = vector.shape_cast %26 : vector<1x1x16x16xf32> to vector<16x16xf32>
    %c0_10 = arith.constant 0 : index
    %c0_11 = arith.constant 0 : index
    %c0_12 = arith.constant 0 : index
    %c0_13 = arith.constant 0 : index
    %28 = vector.load %arg3[%c0_10, %c0_11, %c0_12, %c0_13] : memref<1x4x16x16xf32, #tpu.memory_space<vmem>>, vector<1x1x16x16xf32>
    %29 = vector.shape_cast %28 : vector<1x1x16x16xf32> to vector<16x16xf32>
    %30 = arith.subf %27, %29 : vector<16x16xf32>
    %c0_14 = arith.constant 0 : index
    %c1 = arith.constant 1 : index
    %c0_15 = arith.constant 0 : index
    %c0_16 = arith.constant 0 : index
    %31 = vector.load %arg2[%c0_14, %c1, %c0_15, %c0_16] : memref<1x4x16x16xf32, #tpu.memory_space<vmem>>, vector<1x1x16x16xf32>
    %32 = vector.shape_cast %31 : vector<1x1x16x16xf32> to vector<16x16xf32>
    %c0_17 = arith.constant 0 : index
    %c1_18 = arith.constant 1 : index
    %c0_19 = arith.constant 0 : index
    %c0_20 = arith.constant 0 : index
    %33 = vector.load %arg3[%c0_17, %c1_18, %c0_19, %c0_20] : memref<1x4x16x16xf32, #tpu.memory_space<vmem>>, vector<1x1x16x16xf32>
    %34 = vector.shape_cast %33 : vector<1x1x16x16xf32> to vector<16x16xf32>
    %35 = arith.subf %32, %34 : vector<16x16xf32>
    %36 = arith.addf %30, %35 : vector<16x16xf32>
    %c0_21 = arith.constant 0 : index
    %c2 = arith.constant 2 : index
    %c0_22 = arith.constant 0 : index
    %c0_23 = arith.constant 0 : index
    %37 = vector.load %arg2[%c0_21, %c2, %c0_22, %c0_23] : memref<1x4x16x16xf32, #tpu.memory_space<vmem>>, vector<1x1x16x16xf32>
    %38 = vector.shape_cast %37 : vector<1x1x16x16xf32> to vector<16x16xf32>
    %c0_24 = arith.constant 0 : index
    %c2_25 = arith.constant 2 : index
    %c0_26 = arith.constant 0 : index
    %c0_27 = arith.constant 0 : index
    %39 = vector.load %arg3[%c0_24, %c2_25, %c0_26, %c0_27] : memref<1x4x16x16xf32, #tpu.memory_space<vmem>>, vector<1x1x16x16xf32>
    %40 = vector.shape_cast %39 : vector<1x1x16x16xf32> to vector<16x16xf32>
    %41 = arith.subf %38, %40 : vector<16x16xf32>
    %42 = arith.addf %36, %41 : vector<16x16xf32>
    %c0_28 = arith.constant 0 : index
    %c3 = arith.constant 3 : index
    %c0_29 = arith.constant 0 : index
    %c0_30 = arith.constant 0 : index
    %43 = vector.load %arg2[%c0_28, %c3, %c0_29, %c0_30] : memref<1x4x16x16xf32, #tpu.memory_space<vmem>>, vector<1x1x16x16xf32>
    %44 = vector.shape_cast %43 : vector<1x1x16x16xf32> to vector<16x16xf32>
    %c0_31 = arith.constant 0 : index
    %c3_32 = arith.constant 3 : index
    %c0_33 = arith.constant 0 : index
    %c0_34 = arith.constant 0 : index
    %45 = vector.load %arg3[%c0_31, %c3_32, %c0_33, %c0_34] : memref<1x4x16x16xf32, #tpu.memory_space<vmem>>, vector<1x1x16x16xf32>
    %46 = vector.shape_cast %45 : vector<1x1x16x16xf32> to vector<16x16xf32>
    %47 = arith.subf %44, %46 : vector<16x16xf32>
    %48 = arith.addf %42, %47 : vector<16x16xf32>
    %cst_35 = arith.constant dense<0.000000e+00> : vector<4x16xf32>
    %49 = tpu.matmul %12, %48, %cst_35 {dimension_numbers = #tpu.dot_dimension_numbers<[1], [0], [0], [1], [0, 0, 1, 1], [], []>} : vector<4x16xf32>, vector<16x16xf32>, vector<4x16xf32> -> vector<4x16xf32>
    %cst_36 = arith.constant dense<0.000000e+00> : vector<4x4xf32>
    %50 = tpu.matmul %49, %25, %cst_36 {dimension_numbers = #tpu.dot_dimension_numbers<[1], [0], [0], [1], [0, 0, 1, 1], [], []>} : vector<4x16xf32>, vector<16x4xf32>, vector<4x4xf32> -> vector<4x4xf32>
    %c0_37 = arith.constant 0 : index
    %c0_38 = arith.constant 0 : index
    %c0_39 = arith.constant 0 : index
    %51 = vector.load %arg5[%c0_37, %c0_38, %c0_39] : memref<1x4x4xf32, #tpu.memory_space<vmem>>, vector<1x4x4xf32>
    %52 = vector.shape_cast %51 : vector<1x4x4xf32> to vector<4x4xf32>
    %53 = vector.shape_cast %50 : vector<4x4xf32> to vector<1x4x4xf32>
    tpu.vector_store %arg5[%c0_37, %c0_38, %c0_39], %53 {strides = array<i32>} : memref<1x4x4xf32, #tpu.memory_space<vmem>>, vector<1x4x4xf32>,
    %54 = tpu.iota {dimensions = array<i32: 0>} : vector<4x4xi32>
    %55 = tpu.iota {dimensions = array<i32: 1>} : vector<4x4xi32>
    %c0_40 = arith.constant 0 : index
    %c0_41 = arith.constant 0 : index
    %c0_42 = arith.constant 0 : index
    %56 = vector.load %arg5[%c0_40, %c0_41, %c0_42] : memref<1x4x4xf32, #tpu.memory_space<vmem>>, vector<1x4x4xf32>
    %57 = vector.shape_cast %56 : vector<1x4x4xf32> to vector<4x4xf32>
    %cst_43 = arith.constant 0.000000e+00 : f32
    %58 = vector.broadcast %cst_43 : f32 to vector<4x4xf32>
    %c0_i32_44 = arith.constant 0 : i32
    %59 = vector.broadcast %c0_i32_44 : i32 to vector<4x4xi32>
    %60 = arith.cmpi eq, %55, %59 : vector<4x4xi32>
    %c1_i32 = arith.constant 1 : i32
    %61 = tpu.dynamic_rotate %57 by %c1_i32 dim 1 : vector<4x4xf32>, i32 -> vector<4x4xf32>
    %62 = arith.select %60, %58, %61 : vector<4x4xi1>, vector<4x4xf32>
    %c3_i32 = arith.constant 3 : i32
    %63 = vector.broadcast %c3_i32 : i32 to vector<4x4xi32>
    %64 = arith.cmpi eq, %55, %63 : vector<4x4xi32>
    %c3_i32_45 = arith.constant 3 : i32
    %65 = tpu.dynamic_rotate %57 by %c3_i32_45 dim 1 : vector<4x4xf32>, i32 -> vector<4x4xf32>
    %66 = arith.select %64, %58, %65 : vector<4x4xi1>, vector<4x4xf32>
    %c0_i32_46 = arith.constant 0 : i32
    %67 = vector.broadcast %c0_i32_46 : i32 to vector<4x4xi32>
    %68 = arith.cmpi eq, %54, %67 : vector<4x4xi32>
    %c1_i32_47 = arith.constant 1 : i32
    %69 = tpu.dynamic_rotate %57 by %c1_i32_47 dim 0 : vector<4x4xf32>, i32 -> vector<4x4xf32>
    %70 = arith.select %68, %58, %69 : vector<4x4xi1>, vector<4x4xf32>
    %c3_i32_48 = arith.constant 3 : i32
    %71 = vector.broadcast %c3_i32_48 : i32 to vector<4x4xi32>
    %72 = arith.cmpi eq, %54, %71 : vector<4x4xi32>
    %c3_i32_49 = arith.constant 3 : i32
    %73 = tpu.dynamic_rotate %57 by %c3_i32_49 dim 0 : vector<4x4xf32>, i32 -> vector<4x4xf32>
    %74 = arith.select %72, %58, %73 : vector<4x4xi1>, vector<4x4xf32>
    %75 = arith.subf %57, %62 : vector<4x4xf32>
    %76 = arith.subf %57, %66 : vector<4x4xf32>
    %77 = arith.subf %57, %70 : vector<4x4xf32>
    %78 = arith.subf %57, %74 : vector<4x4xf32>
    %79 = arith.mulf %75, %75 : vector<4x4xf32>
    %80 = arith.mulf %76, %76 : vector<4x4xf32>
    %81 = arith.addf %79, %80 : vector<4x4xf32>
    %82 = arith.mulf %77, %77 : vector<4x4xf32>
    %83 = arith.addf %81, %82 : vector<4x4xf32>
    %84 = arith.mulf %78, %78 : vector<4x4xf32>
    %85 = arith.addf %83, %84 : vector<4x4xf32>
    %c0_50 = arith.constant 0 : index
    %c0_51 = arith.constant 0 : index
    %c0_52 = arith.constant 0 : index
    %86 = vector.load %arg4[%c0_50, %c0_51, %c0_52] : memref<1x4x4xf32, #tpu.memory_space<vmem>>, vector<1x4x4xf32>
    %87 = vector.shape_cast %86 : vector<1x4x4xf32> to vector<4x4xf32>
    %88 = vector.shape_cast %85 : vector<4x4xf32> to vector<1x4x4xf32>
    tpu.vector_store %arg4[%c0_50, %c0_51, %c0_52], %88 {strides = array<i32>} : memref<1x4x4xf32, #tpu.memory_space<vmem>>, vector<1x4x4xf32>,
    return
  }
  func.func @transform_0(%arg0: i32, %arg1: i32) -> (i32, i32, i32, i32) {
    %c0_i32 = arith.constant 0 : i32
    %c0_i32_0 = arith.constant 0 : i32
    %c0_i32_1 = arith.constant 0 : i32
    return %arg0, %c0_i32, %arg1, %c0_i32_0 : i32, i32, i32, i32
  }
  func.func @transform_1(%arg0: i32, %arg1: i32) -> (i32, i32, i32, i32) {
    %c0_i32 = arith.constant 0 : i32
    %c0_i32_0 = arith.constant 0 : i32
    %c0_i32_1 = arith.constant 0 : i32
    return %arg0, %c0_i32, %arg1, %c0_i32_0 : i32, i32, i32, i32
  }
  func.func @transform_2(%arg0: i32, %arg1: i32) -> (i32, i32, i32) {
    %c0_i32 = arith.constant 0 : i32
    %c0_i32_0 = arith.constant 0 : i32
    %c0_i32_1 = arith.constant 0 : i32
    return %arg0, %c0_i32, %c0_i32_0 : i32, i32, i32
  }
}

</mosaic_0001>

<bundles_post_ra>
// kernel: tpu_custom_call.1
= control target key start
LH: loop header
LB: loop body
LE: loop exit
PB: predicated region body
PF: predicated region fallthrough
CT: control target
= control target key end

     0   :  { %7 = vsyncpa [#allocation4], 0  ;;  %s1177_s0 = inlined_call_operand.hbm [shape: f32[2,4,16,16], index: 0, kind: input, shape index: {}]   ;;  %s1178_s1 = inlined_call_operand.hbm [shape: f32[2,4,16,16], index: 1, kind: input, shape index: {}]   ;;  %s1179_s2 = inlined_call_operand.hbm [shape: f32[2,4,4], index: 2, kind: output, shape index: {}]  }
   0x1   :  { %9 = vsyncpa [#allocation4 + $0x1], 0 }
   0x2   :  { %10 = vsyncpa [#allocation7], 0 }
   0x3   :  { %12 = vsyncpa [#allocation7 + $0x1], 0 }
   0x4   :  { %13 = vsyncpa [#allocation5], 0 }
   0x5   :  { %15 = vsyncpa [#allocation5 + $0x1], 0  ;;  %s907_s9 = smov 0   ;;  %s909_s10 = smov 0  }
   0x6   :  { %s911_s11 = smov 0   ;;  %s913_s12 = smov 0  }
   0x7   :  { %s915_s13 = smov 0   ;;  %s917_s14 = smov 0  }
   0x8 LB: > { %s594_s15 = sadd.s32 4294967295, %s878_s14   ;;  %s595_s16 = sadd.s32 4294967294, %s878_s14   ;;  %s878_s14 = sphi %s917_s14, %s21_s14   ;;  %s874_s13 = sphi %s915_s13, %s1197_s13   ;;  %s870_s12 = sphi %s913_s12, %s1196_s12   ;;  %s866_s11 = sphi %s911_s11, %s1195_s11   ;;  %s862_s10 = sphi %s909_s10, %s1194_s10   ;;  %s858_s9 = sphi %s907_s9, %s1193_s9  }
   0x9   : > { %s33_s17 = sadd.s32 1, %s874_s13  ;;  %s42_s18 = sadd.s32 1, %s866_s11 }
   0xa   : > { %p35_p0 = scmp.ge.s32.totalorder %s33_s17, 2  ;;  %p49_p1 = scmp.ne.s32.totalorder %s866_s11, %s862_s10 }
   0xb   : > { %p50_p2 = scmp.eq.s32.totalorder %s878_s14, 0  ;;  %p55_p3 = scmp.ne.s32.totalorder %s862_s10, %s858_s9 }
   0xc   : > { %s1199_s17 = smov (%p35_p0, %s33_s17), 0  ;;  %p56_p5 = scmp.eq.s32.totalorder %s594_s15, 0 }
   0xd   : > { %p948_p4 = por %p50_p2, %p49_p1  ;;  %s37_s20 = ssub.s32 %s874_s13, %s1199_s17 }
   0xe   : > { %p107_p6 = scmp.eq.s32.totalorder %s594_s15, 1  ;;  %p40_p7 = scmp.eq.s32.totalorder %s37_s20, 0 }
   0xf   : > { %p954_p8 = por %p56_p5, %p55_p3  ;;  %p113_p10 = scmp.eq.s32.totalorder %s595_s16, 1 }
  0x10   : > { %p958_p9 = por %p107_p6, %p49_p1  ;;  %p673_p13 = scmp.lt.s32.totalorder %s878_s14, 2 }
  0x11   : > { %s1183_s21 = scalar_select %p954_p8, 1, 0 }
  0x12   : > { %s1184_s22 = scalar_select %p958_p9, 1, 0 }
  0x13   : > { %s963_s23 = scalar_select %p40_p7, %s866_s11, %s42_s18  }
  0x14   : > { %p965_p11 = por %p113_p10, %p55_p3  ;;  %s972_s25 = sand.u32 1, %s866_s11  }
  0x15   : > { %s598_s26 = sshll.u32 %s972_s25, 6  ;;  %s628_s27 = sshll.u32 %s874_s13, 10 }
  0x16   : > { %s1185_s24 = scalar_select %p965_p11, 1, 0 }
  0x17   : > { %s981_s30 = scalar_lea.hbm %s1177_s0, %s628_s27  ;;  %s137_s3 = scalar_lea.vmem [#allocation3], %s598_s26 }
  0x18   : > { %s146_s4 = sshll.u32 %s137_s3, 4  ;;  %p989_p0 = pnand %p673_p13, %p948_p4  ;;  %s985_s4 = int_to_ptr.vmem [resolvable:$true] %s146_s4 }
  0x19   : > { %s134_s6 = scalar_lea.sflag [#allocation4], %s972_s25  ;;  %s732_s7 = scalar_lea.hbm %s981_s30, 1024 }
  0x1a   : > { %p733_p2 = scmp.ne.s32.totalorder %s981_s30, %s732_s7  ;;  %p734_p3 = pneg %p989_p0 }
  0x1b   : > { %s737_s16 = scalar_lea.hbm %s1177_s0, 2048  ;;  %p738_p4 = scmp.lt.u32.totalorder %s981_s30, %s1177_s0 }
  0x1c   : > { %p735_p5 = pnand %p734_p3, %p733_p2  ;;  %p739_p7 = scmp.lt.u32.totalorder %s737_s16, %s732_s7 }
  0x1d   : > { %p741_p13 = scmp.lt.u32.totalorder %s732_s7, %s981_s30 }
  0x1e   : > { %p736_p6 = pneg %p735_p5  ;;  %p740_p10 = por %p739_p7, %p738_p4 }
  0x20   : > { %p742_p12 = por %p741_p13, %p740_p10 }
  0x22   : > { %p743_p1 = pnand %p742_p12, %p736_p6 }
  0x24   : > { %746 = shalt.err (!%p743_p1)
}
  0x25   : > { %s747_s20 = scalar_lea.vmem %s985_s4, 1024  ;;  %s880_s28 = smov [#allocation3]  }
  0x26   : > { %p748_p2 = scmp.ne.s32.totalorder %s985_s4, %s747_s20  ;;  %s752_s29 = sshll.u32 %s880_s28, 4  ;;  %s753_s29 = int_to_ptr.vmem [resolvable:$false] %s752_s29 }
  0x27   : > { %s754_s3 = scalar_lea.vmem %s753_s29, 2048  ;;  %p755_p9 = scmp.lt.s32.totalorder %s985_s4, %s753_s29 }
  0x28   : > { %p750_p5 = pnand %p748_p2, %p734_p3  ;;  %p756_p4 = scmp.lt.s32.totalorder %s754_s3, %s747_s20 }
  0x2a   : > { %p751_p11 = pneg %p750_p5  ;;  %p757_p7 = por %p756_p4, %p755_p9 }
  0x2c   : > { %p758_p10 = pnand %p757_p7, %p751_p11 }
  0x2e   : > { %761 = shalt.err (!%p758_p10)
}
  0x2f   : > { %s881_s7 = smov 128   ;;  %s882_s8 = smov 8  }
  0x30   : > { %665 = dma.hbm_to_vmem [thread:$0]  (!%p989_p0), %s981_s30, 1024, %s985_s4, %s134_s6, %s881_s7, %s881_s7, %s882_s8  }
  0x31   : > { %p177_p9 = scmp.lt.s32.totalorder %s878_s14, 3  ;;  %s1031_s18 = scalar_lea.hbm %s1178_s1, %s628_s27 }
  0x32   : > { %p1187_p11 = scmp.ge.s32.totalorder %s878_s14, 1  ;;  %s160_s20 = scalar_lea.vmem [#allocation6], %s598_s26 }
  0x33   : > { %s169_s28 = sshll.u32 %s160_s20, 4  ;;  %s157_s30 = scalar_lea.sflag [#allocation7], %s972_s25  ;;  %s1041_s28 = int_to_ptr.vmem [resolvable:$true] %s169_s28 }
  0x34   : > { %p1035_p12 = pnand %p1187_p11, %p177_p9  ;;  %s762_s4 = scalar_lea.hbm %s1031_s18, 1024 }
  0x35   : > { %p763_p1 = scmp.ne.s32.totalorder %s1031_s18, %s762_s4  ;;  %s767_s29 = scalar_lea.hbm %s1178_s1, 2048 }
  0x36   : > { %p768_p2 = scmp.lt.u32.totalorder %s1031_s18, %s1178_s1  ;;  %p769_p5 = scmp.lt.u32.totalorder %s767_s29, %s762_s4 }
  0x37   : > { %p765_p6 = pnand %p763_p1, %p734_p3  ;;  %p771_p7 = scmp.lt.u32.totalorder %s762_s4, %s1031_s18 }
  0x38   : > { %p770_p4 = por %p769_p5, %p768_p2 }
  0x39   : > { %p766_p13 = pneg %p765_p6 }
  0x3a   : > { %p772_p10 = por %p771_p7, %p770_p4 }
  0x3c   : > { %p773_p9 = pnand %p772_p10, %p766_p13 }
  0x3e   : > { %776 = shalt.err (!%p773_p9)
}
  0x3f   : > { %s777_s26 = scalar_lea.vmem %s1041_s28, 1024  ;;  %s883_s16 = smov [#allocation6]  }
  0x40   : > { %p778_p11 = scmp.ne.s32.totalorder %s1041_s28, %s777_s26  ;;  %s782_s20 = sshll.u32 %s883_s16, 4  ;;  %s783_s20 = int_to_ptr.vmem [resolvable:$false] %s782_s20 }
  0x41   : > { %s784_s27 = scalar_lea.vmem %s783_s20, 2048  ;;  %p785_p8 = scmp.lt.s32.totalorder %s1041_s28, %s783_s20 }
  0x42   : > { %p780_p1 = pnand %p778_p11, %p734_p3  ;;  %p786_p2 = scmp.lt.s32.totalorder %s784_s27, %s777_s26 }
  0x44   : > { %p781_p6 = pneg %p780_p1  ;;  %p787_p5 = por %p786_p2, %p785_p8 }
  0x46   : > { %p788_p4 = pnand %p787_p5, %p781_p6 }
  0x48   : > { %791 = shalt.err (!%p788_p4)
}
  0x49   : > { %668 = dma.hbm_to_vmem [thread:$0]  (!%p989_p0), %s1031_s18, 1024, %s1041_s28, %s157_s30, %s881_s7, %s881_s7, %s882_s8  }
  0x4a   : > { %181 = sbr.rel (%p1035_p12) target bundleno = 910 (0x38e), region = 28  ;;  %s1075_s4 = sand.u32 (!%p1035_p12), 1, %s862_s10  }
  0x4b   : > { %s605_s6 = sshll.u32 (!%p1035_p12), %s1075_s4, 6  ;;  %s184_s29 = scalar_lea.sflag (!%p1035_p12), [#allocation4], %s1075_s4 }
  0x4c   : > { %s1079_s5 = scalar_lea.vmem (!%p1035_p12), [#allocation3], %s605_s6  ;;  %p1189_p8 = scmp.ne.s32.totalorder (!%p1035_p12), %s1183_s21, 0 }
  0x51   : > { %845 = dma.done.wait (%p1189_p8), %s184_s29, 1024  }
  0x52   : > { %847 = vsyncadd (%p1189_p8), %s184_s29, 4294966272  ;;  %s193_s25 = scalar_lea.sflag [#allocation7], %s1075_s4  ;;  %s1086_s7 = scalar_lea.vmem [#allocation6], %s605_s6 }
  0x53   : > { %849 = dma.done.wait (%p1189_p8), %s193_s25, 1024  }
  0x54   : > { %851 = vsyncadd (%p1189_p8), %s193_s25, 4294966272  ;;  %v224_v0 = vlaneseq  ;;  %v884_v1 = vmov 0.0|0.0   ;;  %vm885_vm0 = vmmov 0   ;;  %v886_v2 = vmov 0.0   ;;  %v246_v9 = vld [vmem:[%s1079_s5] sm:$0xff]  ;;  %v247_v10 = vld [vmem:[%s1079_s5 + $0x8] sm:$0xff] }
  0x55   : > { %650 = vmatprep.subr.bf16.mxu0 %v884_v1  ;;  %640 = vmatprep.mubr.msk.f32.mxu0 %vm885_vm0, %v886_v2  ;;  %v248_v11 = vld [vmem:[%s1086_s7] sm:$0xff]  ;;  %v249_v13 = vld [vmem:[%s1086_s7 + $0x8] sm:$0xff]  ;;  %v608_v15 = vld [vmem:[%s1079_s5 + $0x10] sm:$0xff]  ;;  %v887_v41 = vmov 0.25|0.25   ;;  %vm282_vm11 = vcmask 130048  }
  0x56   : > { %v1092_v3 = vshrl.u32 %v224_v0, 7  ;;  %v1094_v4 = vand.u32 127, %v224_v0  ;;  %653 = vmatprep.subr.bf16.mxu1 %v884_v1  ;;  %647 = vmatprep.mubr.msk.f32.mxu1 %vm885_vm0, %v886_v2  ;;  %v250_v14 = vsub.f32 %v246_v9, %v248_v11  ;;  %v609_v16 = vld [vmem:[%s1079_s5 + $0x18] sm:$0xff]  ;;  %v251_v17 = vsub.f32 %v247_v10, %v249_v13  ;;  %v610_v18 = vld [vmem:[%s1086_s7 + $0x10] sm:$0xff]  ;;  %v612_v20 = vld [vmem:[%s1079_s5 + $0x20] sm:$0xff]  ;;  %s888_s21 = smov 4  }
  0x57   : > { %v611_v19 = vld [vmem:[%s1086_s7 + $0x18] sm:$0xff]  ;;  %v258_v22 = vsub.f32 %v608_v15, %v610_v18  ;;  %v613_v24 = vld [vmem:[%s1079_s5 + $0x28] sm:$0xff]  ;;  %v614_v25 = vld [vmem:[%s1086_s7 + $0x20] sm:$0xff]  ;;  %vm429_vm12 = vcmask 27648   ;;  %vm433_vm13 = vcmask 1047584   ;;  %s889_s8 = smov 125  }
  0x58   : > { %v234_v5 = vadd.s32 8, %v1092_v3  ;;  %v235_v6 = vmul.u32 4, %v1094_v4  ;;  %v228_v7 = vmul.u32 4, %v1092_v3  ;;  %v259_v23 = vsub.f32 %v609_v16, %v611_v19  ;;  %v615_v26 = vld [vmem:[%s1086_s7 + $0x28] sm:$0xff]  ;;  %v616_v29 = vld [vmem:[%s1079_s5 + $0x30] sm:$0xff]  ;;  %v617_v30 = vld [vmem:[%s1079_s5 + $0x38] sm:$0xff] }
  0x59   : > { %v268_v27 = vsub.f32 %v612_v20, %v614_v25  ;;  %v269_v28 = vsub.f32 %v613_v24, %v615_v26  ;;  %v618_v31 = vld [vmem:[%s1086_s7 + $0x30] sm:$0xff]  ;;  %v260_v32 = vadd.f32 %v258_v22, %v250_v14  ;;  %v619_v34 = vld [vmem:[%s1086_s7 + $0x38] sm:$0xff]  ;;  %s890_s18 = smov 127   ;;  %vm451_vm14 = vcmask 1047556   ;;  %s607_s19 = sshll.u32 %s1075_s4, 2 }
  0x5a   : > { %v236_v8 = vsub.s32 %v1092_v3, %v235_v6  ;;  %v237_v12 = vsub.s32 %v234_v5, %v235_v6  ;;  %v229_v21 = vsub.s32 %v1094_v4, %v228_v7  ;;  %v261_v33 = vadd.f32 %v259_v23, %v251_v17  ;;  %s625_s28 = sshll.u32 %s870_s12, 6  ;;  %s221_s30 = scalar_lea.vmem [#allocation8], %s607_s19 }
  0x5b   : > { %v278_v35 = vsub.f32 %v616_v29, %v618_v31  ;;  %v279_v36 = vsub.f32 %v617_v30, %v619_v34  ;;  %v270_v37 = vadd.f32 %v268_v27, %v260_v32  ;;  %vm432_vm15 = vcmp.eq.s32.totalorder %v1094_v4, 0  ;;  %s490_s3 = sshll.u32 %s221_s30, 4  ;;  %s1127_s16 = scalar_lea.hbm %s1179_s2, %s625_s28  ;;  %s1129_s3 = int_to_ptr.vmem [resolvable:$true] %s490_s3 }
  0x5c   : > { %vm238_vm1 = vcmp.ge.s32.totalorder %v236_v8, 0  ;;  %vm240_vm2 = vcmp.lt.s32.totalorder %v236_v8, 4  ;;  %vm239_vm3 = vcmp.ge.s32.totalorder %v237_v12, 0  ;;  %vm241_vm4 = vcmp.lt.s32.totalorder %v237_v12, 4  ;;  %s477_s20 = scalar_lea.sflag [#allocation5], %s1075_s4  ;;  %s792_s27 = scalar_lea.vmem %s1129_s3, 64 }
  0x5d   : > { %vm242_vm5 = vmand %vm238_vm1, %vm240_vm2  ;;  %v271_v38 = vadd.f32 %v269_v28, %v261_v33  ;;  %vm230_vm6 = vcmp.ge.s32.totalorder %v229_v21, 0  ;;  %vm231_vm7 = vcmp.lt.s32.totalorder %v229_v21, 4  ;;  %v280_v39 = vadd.f32 %v278_v35, %v270_v37  ;;  %p793_p0 = scmp.ne.s32.totalorder %s1129_s3, %s792_s27  ;;  %p1190_p3 = scmp.ne.s32.totalorder %s1184_s22, 0 }
  0x5e   : > { %vm243_vm8 = vmand %vm239_vm3, %vm241_vm4  ;;  %vm450_vm0 = vcmp.eq.s32.totalorder %v1092_v3, 0  ;;  %vm445_vm1 = vcmp.eq.s32.totalorder %v1094_v4, 3  ;;  %vm460_vm2 = vcmp.eq.s32.totalorder %v1092_v3, 3  ;;  %s891_s12 = smov [#allocation8]  }
  0x5f   : > { %vm654_vm9 = vmpackc.low %vm243_vm8, %vm242_vm5  ;;  %v281_v40 = vadd.f32 %v279_v36, %v271_v38  ;;  %p794_p12 = pnand %p793_p0, %p1190_p3  ;;  %s796_s6 = sshll.u32 %s891_s12, 4  ;;  %s797_s6 = int_to_ptr.vmem [resolvable:$false] %s796_s6 }
  0x60   : > { %655 = vmatpush3.bf16.msk.msra.mxu1 %vm654_vm9, %v887_v41  ;;  %vm232_vm10 = vmand %vm230_vm6, %vm231_vm7  ;;  %s798_s29 = scalar_lea.vmem %s797_s6, 128  ;;  %p799_p7 = scmp.lt.s32.totalorder %s1129_s3, %s797_s6 }
  0x61   : > { %v651_v42 = vpack.c.bf16 %v281_v40, %v280_v39  ;;  %v233_v43 = vsel %vm232_vm10, 0.0625, %v886_v2  ;;  %p795_p13 = pneg %p794_p12  ;;  %p800_p10 = scmp.lt.s32.totalorder %s798_s29, %s792_s27 }
  0x63   : > { %652 = vmatpush3.bf16.msra.mxu0 %v651_v42  ;;  %p801_p9 = por %p800_p10, %p799_p7 }
  0x65   : > { %p802_p11 = pnand %p801_p9, %p795_p13 }
  0x66   : > { %641 = vmatmul.mubr.msk.f32.vlgmr.msra.gmra.mrb[0].mxu0 %vm282_vm11, %v233_v43 }
 0x139   : > { %v352_v44 = vpop.f32.mrb[0].mxu0 }
 0x13a   : > { %v642_v45 = vpop.f32.mrb[1].mxu0  ;;  %648 = vmatmul.mubr.msk.f32.vlgmr.msra.gmra.mrb[0].mxu1 %vm282_vm11, %v352_v44 }
 0x20d   : > { %v425_v46 = vpop.f32.mrb[0].mxu1 }
 0x20e   : > { %430 = vst.msk [vmem:[#allocation2] sm:$0xf] %vm429_vm12, %v425_v46  ;;  %v649_v47 = vpop.f32.mrb[1].mxu1 }
 0x215   : > { %v431_v48 = vld [vmem:[#allocation2] sm:$0xf] }
 0x216   : > { %434 = vrot.lane.b32.xlu0 %v431_v48, %s888_s21  ;;  %v452_v53 = vrot.slane %v431_v48, 4 }
 0x218   : > { %v453_v54 = vsel %vm451_vm14, %v452_v53, %v431_v48 }
 0x219   : > { %v454_v55 = vrot.slane %v453_v54, 4 }
 0x21b   : > { %v455_v56 = vsel %vm451_vm14, %v454_v55, %v431_v48 }
 0x21c   : > { %v457_v57 = vrot.slane %v455_v56, 3  ;;  %v461_v60 = vrot.slane %v455_v56, 1 }
 0x21e   : > { %v459_v61 = vsel %vm450_vm0, 0.0, %v457_v57  ;;  %v463_v1 = vsel %vm460_vm2, 0.0, %v461_v60 }
 0x21f   : > { %v466_v5 = vsub.f32 %v431_v48, %v459_v61  ;;  %v467_v7 = vsub.f32 %v431_v48, %v463_v1 }
 0x221   : > { %v471_v10 = vmul.f32 %v466_v5, %v466_v5  ;;  %v473_v3 = vmul.f32 %v467_v7, %v467_v7 }
 0x288   : > { %v435_v49 = vpop.permute.xlu0 %434 }
 0x289   : > { %v436_v50 = vsel %vm433_vm13, %v435_v49, %v431_v48 }
 0x28a   : > { %437 = vrot.lane.b32.xlu0 %v436_v50, %s888_s21 }
 0x2fc   : > { %v438_v51 = vpop.permute.xlu0 %437 }
 0x2fd   : > { %v439_v52 = vsel %vm433_vm13, %v438_v51, %v431_v48 }
 0x2fe   : > { %441 = vrot.lane.b32.xlu1 %v439_v52, %s889_s8 }
 0x302   : > { %446 = vrot.lane.b32.xlu1 %v439_v52, %s890_s18 }
 0x370   : > { %v442_v58 = vpop.permute.xlu1 %441 }
 0x371   : > { %v444_v59 = vsel %vm432_vm15, 0.0, %v442_v58 }
 0x372   : > { %v464_v62 = vsub.f32 %v431_v48, %v444_v59 }
 0x374   : > { %v447_v63 = vpop.permute.xlu1 %446  ;;  %v468_v6 = vmul.f32 %v464_v62, %v464_v62 }
 0x375   : > { %v449_v0 = vsel %vm445_vm1, 0.0, %v447_v63 }
 0x376   : > { %v465_v2 = vsub.f32 %v431_v48, %v449_v0 }
 0x378   : > { %v469_v8 = vmul.f32 %v465_v2, %v465_v2 }
 0x37a   : > { %v470_v9 = vadd.f32 %v469_v8, %v468_v6 }
 0x37c   : > { %v472_v4 = vadd.f32 %v471_v10, %v470_v9 }
 0x37e   : > { %v474_v11 = vadd.f32 %v473_v3, %v472_v4 }
 0x380   : > { %475 = vst.msk [vmem:[%s221_s30] sm:$0xf] %vm429_vm12, %v474_v11 }
 0x381   : > { %805 = shalt.err (!%p802_p11)
}
 0x382   : > { %s806_s4 = scalar_lea.hbm %s1127_s16, 64  ;;  %s810_s7 = scalar_lea.hbm %s1179_s2, 128 }
 0x383   : > { %p807_p1 = scmp.ne.s32.totalorder %s1127_s16, %s806_s4  ;;  %p811_p5 = scmp.lt.u32.totalorder %s1127_s16, %s1179_s2 }
 0x384   : > { %p812_p4 = scmp.lt.u32.totalorder %s810_s7, %s806_s4  ;;  %p814_p0 = scmp.lt.u32.totalorder %s806_s4, %s1127_s16 }
 0x385   : > { %p808_p6 = pnand %p807_p1, %p1190_p3 }
 0x386   : > { %p813_p8 = por %p812_p4, %p811_p5 }
 0x387   : > { %p809_p2 = pneg %p808_p6 }
 0x388   : > { %p815_p12 = por %p814_p0, %p813_p8 }
 0x38a   : > { %p816_p13 = pnand %p815_p12, %p809_p2 }
 0x38c   : > { %819 = shalt.err (!%p816_p13)
}
 0x38d   : > { %660 = dma.vmem_to_hbm [thread:$0]  (%p1190_p3), %s1129_s3, 64, %s1127_s16, %s477_s20  }
 0x38e PF: > { %s502_s18 = sand.u32 1, %s858_s9   ;;  %p1191_p7 = scmp.ne.s32.totalorder %s1185_s24, 0 }
 0x38f   : > { %p1192_p10 = scmp.ge.s32.totalorder %s878_s14, 2  ;;  %s503_s19 = scalar_lea.sflag [#allocation5], %s502_s18 }
 0x391   : > { %p670_p9 = pnand %p1192_p10, %p1191_p7 }
 0x393   : > { %853 = dma.done.wait (!%p670_p9), %s503_s19, 64  }
 0x394   : > { %855 = vsyncadd (!%p670_p9), %s503_s19, 4294967232  ;;  %s21_s14 = sadd.s32 1, %s878_s14   ;;  %s1193_s9 = smov %s862_s10 }
 0x395   : > { %p18_p11 = scmp.ge.s32.totalorder %s21_s14, 4   ;;  %s1194_s10 = smov %s866_s11 }
 0x396   : > { %s1195_s11 = smov %s963_s23  ;;  %s1196_s12 = smov %s874_s13 }
 0x397   : > { %s1197_s13 = smov %s1199_s17  ;;  %20 = sbr.rel (!%p18_p11) target bundleno = 8 (0x8), region = 92 }
 0x39e   :  { %508 = vsyncpa [#allocation4], 1 }
 0x39f   :  { %510 = vsyncpa [#allocation4 + $0x1], 1 }
 0x3a0   :  { %511 = vsyncpa [#allocation7], 1 }
 0x3a1   :  { %513 = vsyncpa [#allocation7 + $0x1], 1 }
 0x3a2   :  { %514 = vsyncpa [#allocation5], 1 }
 0x3a3   :  { %516 = vsyncpa [#allocation5 + $0x1], 1 }

</bundles_post_ra>
